<compile_context>
chip_gen: v7x
topology: tpu7x:2x2x1
jax: 0.10.0
libtpu: 0.0.40
codegen_flags: <defaults>
</compile_context>

<pallas_src>
import jax
import jax.numpy as jnp
from jax.experimental import pallas as pl
from jax.experimental.pallas import tpu as pltpu


def _round_up(n, m):
    return ((n + m - 1) // m) * m


def mlp_kernel(x_ref, w1_ref, b1_ref, w2_ref, b2_ref, w3_ref, b3_ref, out_ref):
    # x tile arrives in bf16; matmuls accumulate in f32 on the MXU.
    x = x_ref[...]

    # fc1 + ReLU  (MXU: bf16 x bf16 -> f32 accumulate)
    h1 = jnp.dot(x, w1_ref[...], preferred_element_type=jnp.float32) + b1_ref[...]
    h1 = jnp.maximum(h1, 0.0)

    # fc2 + ReLU
    h2 = jnp.dot(h1.astype(jnp.bfloat16), w2_ref[...],
                 preferred_element_type=jnp.float32) + b2_ref[...]
    h2 = jnp.maximum(h2, 0.0)

    # dropout with rate 0.0 (module default) is the identity in forward; no-op.

    # fc3 (32 -> 1): an N=1 matmul uses 1/128-1/256 of the MXU output lanes, so do
    # it as a VPU multiply + lane reduction. w3_ref is stored as a (1, 32) row.
    logits = jnp.sum(h2 * w3_ref[...], axis=-1, keepdims=True) + b3_ref[...]

    # sigmoid via EUP exp + approximate reciprocal (keeps the divide off the VALU).
    e = jnp.exp(-logits)
    out_ref[...] = pl.reciprocal(1.0 + e, approx=True).astype(out_ref.dtype)


def logistic_regression_forward(x, params, *, block_batch=512):
    """x: (B, input_size) float32. params: dict of pre-transposed weights/biases."""
    B, F = x.shape
    w1, b1, w2, b2, w3, b3 = (
        params["w1"], params["b1"], params["w2"],
        params["b2"], params["w3"], params["b3"],
    )

    # Batch tile: multiple of 8 (sublane), capped by the (padded) batch size.
    # Kept modest so double-buffered x tiles fit comfortably in v7x's 64 MiB VMEM.
    tb = min(block_batch, _round_up(B, 8))
    b_pad = _round_up(B, tb)
    if b_pad != B:
        x = jnp.pad(x, ((0, b_pad - B), (0, 0)))

    # bf16 inputs for the MXU and halved HBM traffic; accumulation stays f32 in-kernel.
    x_bf16 = x.astype(jnp.bfloat16)
    w1_bf16 = w1.astype(jnp.bfloat16)
    w2_bf16 = w2.astype(jnp.bfloat16)
    w3_row = w3.reshape(1, -1).astype(jnp.float32)  # (1, 32) row for the VPU fc3

    grid = (b_pad // tb,)

    def const_spec(a):
        # Whole (small) array, same block every grid step -> stays VMEM-resident.
        return pl.BlockSpec(a.shape, lambda i: (0, 0))

    out = pl.pallas_call(
        mlp_kernel,
        out_shape=jax.ShapeDtypeStruct((b_pad, 1), jnp.float32),
        grid=grid,
        in_specs=[
            pl.BlockSpec((tb, F), lambda i: (i, 0)),   # x: streamed batch tile
            const_spec(w1_bf16), const_spec(b1),
            const_spec(w2_bf16), const_spec(b2),
            const_spec(w3_row), const_spec(b3),
        ],
        out_specs=pl.BlockSpec((tb, 1), lambda i: (i, 0)),
        compiler_params=pltpu.CompilerParams(
            dimension_semantics=("parallel",),
        ),
    )(x_bf16, w1_bf16, b1, w2_bf16, b2, w3_row, b3)

    return out[:B]


def init_params(key, input_size):
    """Deterministic init mimicking nn.Linear's uniform(-1/sqrt(fan_in), 1/sqrt(fan_in))."""
    keys = jax.random.split(key, 6)

    def linear(kw, kb, fan_in, fan_out):
        bound = 1.0 / jnp.sqrt(jnp.float32(fan_in))
        # Stored as (in, out) = torch weight (out, in) transposed.
        w = jax.random.uniform(kw, (fan_in, fan_out), jnp.float32, -bound, bound)
        b = jax.random.uniform(kb, (1, fan_out), jnp.float32, -bound, bound)
        return w, b

    w1, b1 = linear(keys[0], keys[1], input_size, 64)
    w2, b2 = linear(keys[2], keys[3], 64, 32)
    w3, b3 = linear(keys[4], keys[5], 32, 1)
    return {"w1": w1, "b1": b1, "w2": w2, "b2": b2, "w3": w3, "b3": b3}


if __name__ == "__main__":
    key = jax.random.PRNGKey(0)
    k_x, k_p = jax.random.split(key)

    batch = 8
    input_size = 8  # Titanic-style tabular feature count

    x = jax.random.normal(k_x, (batch, input_size), dtype=jnp.float32)
    params = init_params(k_p, input_size)

    out = logistic_regression_forward(x, params)
    out = jax.block_until_ready(out)

    # Sanity: sigmoid output in [0, 1], finite, shape (batch, 1)
    assert out.shape == (batch, 1)
    assert bool(jnp.all(jnp.isfinite(out)))
    assert bool(jnp.all((out >= 0.0) & (out <= 1.0)))

    print("KERNEL_OK")
</pallas_src>

<mosaic_0001>
module attributes {stable_mosaic.version = 11 : i64} {
  func.func @mlp_kernel(%arg0: i32, %arg1: memref<8x8xbf16, #tpu.memory_space<vmem>>, %arg2: memref<8x64xbf16, #tpu.memory_space<vmem>>, %arg3: memref<1x64xf32, #tpu.memory_space<vmem>>, %arg4: memref<64x32xbf16, #tpu.memory_space<vmem>>, %arg5: memref<1x32xf32, #tpu.memory_space<vmem>>, %arg6: memref<1x32xf32, #tpu.memory_space<vmem>>, %arg7: memref<1x1xf32, #tpu.memory_space<vmem>>, %arg8: memref<8x1xf32, #tpu.memory_space<vmem>>) attributes {dimension_semantics = [#tpu.dimension_semantics<parallel>], iteration_bounds = array<i64: 1>, scalar_prefetch = 0 : i64, scratch_operands = 0 : i64, tpu.core_type = #tpu.core_type<tc>, window_params = [{transform_indices = @transform_0, window_bounds = array<i64: 8, 8>}, {pipeline_mode = #tpu.pipeline_mode<synchronous>, transform_indices = @transform_1, window_bounds = array<i64: 8, 64>}, {pipeline_mode = #tpu.pipeline_mode<synchronous>, transform_indices = @transform_2, window_bounds = array<i64: 1, 64>}, {pipeline_mode = #tpu.pipeline_mode<synchronous>, transform_indices = @transform_3, window_bounds = array<i64: 64, 32>}, {pipeline_mode = #tpu.pipeline_mode<synchronous>, transform_indices = @transform_4, window_bounds = array<i64: 1, 32>}, {pipeline_mode = #tpu.pipeline_mode<synchronous>, transform_indices = @transform_5, window_bounds = array<i64: 1, 32>}, {pipeline_mode = #tpu.pipeline_mode<synchronous>, transform_indices = @transform_6, window_bounds = array<i64: 1, 1>}, {transform_indices = @transform_7, window_bounds = array<i64: 8, 1>}]} {
    %c0 = arith.constant 0 : index
    %c0_0 = arith.constant 0 : index
    %0 = vector.load %arg1[%c0, %c0_0] : memref<8x8xbf16, #tpu.memory_space<vmem>>, vector<8x8xbf16>
    %c0_1 = arith.constant 0 : index
    %c0_2 = arith.constant 0 : index
    %1 = vector.load %arg2[%c0_1, %c0_2] : memref<8x64xbf16, #tpu.memory_space<vmem>>, vector<8x64xbf16>
    %cst = arith.constant dense<0.000000e+00> : vector<8x64xf32>
    %2 = tpu.matmul %0, %1, %cst {dimension_numbers = #tpu.dot_dimension_numbers<[1], [0], [0], [1], [0, 0, 1, 1], [], []>} : vector<8x8xbf16>, vector<8x64xbf16>, vector<8x64xf32> -> vector<8x64xf32>
    %c0_3 = arith.constant 0 : index
    %c0_4 = arith.constant 0 : index
    %3 = vector.load %arg3[%c0_3, %c0_4] : memref<1x64xf32, #tpu.memory_space<vmem>>, vector<1x64xf32>
    %4 = vector.broadcast %3 : vector<1x64xf32> to vector<8x64xf32>
    %5 = arith.addf %2, %4 : vector<8x64xf32>
    %cst_5 = arith.constant 0.000000e+00 : f32
    %6 = vector.broadcast %cst_5 : f32 to vector<8x64xf32>
    %7 = arith.maximumf %5, %6 : vector<8x64xf32>
    %8 = arith.truncf %7 : vector<8x64xf32> to vector<8x64xbf16>
    %c0_6 = arith.constant 0 : index
    %c0_7 = arith.constant 0 : index
    %9 = vector.load %arg4[%c0_6, %c0_7] : memref<64x32xbf16, #tpu.memory_space<vmem>>, vector<64x32xbf16>
    %cst_8 = arith.constant dense<0.000000e+00> : vector<8x32xf32>
    %10 = tpu.matmul %8, %9, %cst_8 {dimension_numbers = #tpu.dot_dimension_numbers<[1], [0], [0], [1], [0, 0, 1, 1], [], []>} : vector<8x64xbf16>, vector<64x32xbf16>, vector<8x32xf32> -> vector<8x32xf32>
    %c0_9 = arith.constant 0 : index
    %c0_10 = arith.constant 0 : index
    %11 = vector.load %arg5[%c0_9, %c0_10] : memref<1x32xf32, #tpu.memory_space<vmem>>, vector<1x32xf32>
    %12 = vector.broadcast %11 : vector<1x32xf32> to vector<8x32xf32>
    %13 = arith.addf %10, %12 : vector<8x32xf32>
    %cst_11 = arith.constant 0.000000e+00 : f32
    %14 = vector.broadcast %cst_11 : f32 to vector<8x32xf32>
    %15 = arith.maximumf %13, %14 : vector<8x32xf32>
    %c0_12 = arith.constant 0 : index
    %c0_13 = arith.constant 0 : index
    %16 = vector.load %arg6[%c0_12, %c0_13] : memref<1x32xf32, #tpu.memory_space<vmem>>, vector<1x32xf32>
    %17 = vector.broadcast %16 : vector<1x32xf32> to vector<8x32xf32>
    %18 = arith.mulf %15, %17 : vector<8x32xf32>
    %cst_14 = arith.constant dense<0.000000e+00> : vector<8xf32>
    %19 = vector.multi_reduction <add>, %18, %cst_14 [1] : vector<8x32xf32> to vector<8xf32>
    %20 = vector.shape_cast %19 : vector<8xf32> to vector<8x1xf32>
    %c0_15 = arith.constant 0 : index
    %c0_16 = arith.constant 0 : index
    %21 = vector.load %arg7[%c0_15, %c0_16] : memref<1x1xf32, #tpu.memory_space<vmem>>, vector<1x1xf32>
    %22 = vector.broadcast %21 : vector<1x1xf32> to vector<8x1xf32>
    %23 = arith.addf %20, %22 : vector<8x1xf32>
    %cst_17 = arith.constant 0.000000e+00 : f32
    %24 = vector.broadcast %cst_17 : f32 to vector<8x1xf32>
    %25 = arith.subf %24, %23 : vector<8x1xf32>
    %26 = math.exp %25 : vector<8x1xf32>
    %cst_18 = arith.constant 1.000000e+00 : f32
    %27 = vector.broadcast %cst_18 : f32 to vector<8x1xf32>
    %28 = arith.addf %27, %26 : vector<8x1xf32>
    %29 = tpu.reciprocal %28 {approx = true} : vector<8x1xf32> -> vector<8x1xf32>
    %c0_19 = arith.constant 0 : index
    %c0_20 = arith.constant 0 : index
    %30 = vector.load %arg8[%c0_19, %c0_20] : memref<8x1xf32, #tpu.memory_space<vmem>>, vector<8x1xf32>
    tpu.vector_store %arg8[%c0_19, %c0_20], %29 {strides = array<i32>} : memref<8x1xf32, #tpu.memory_space<vmem>>, vector<8x1xf32>,
    return
  }
  func.func @transform_0(%arg0: i32) -> (i32, i32) {
    %c0_i32 = arith.constant 0 : i32
    %c0_i32_0 = arith.constant 0 : i32
    return %arg0, %c0_i32 : i32, i32
  }
  func.func @transform_1(%arg0: i32) -> (i32, i32) {
    %c0_i32 = arith.constant 0 : i32
    %c0_i32_0 = arith.constant 0 : i32
    %c0_i32_1 = arith.constant 0 : i32
    return %c0_i32, %c0_i32_0 : i32, i32
  }
  func.func @transform_2(%arg0: i32) -> (i32, i32) {
    %c0_i32 = arith.constant 0 : i32
    %c0_i32_0 = arith.constant 0 : i32
    %c0_i32_1 = arith.constant 0 : i32
    return %c0_i32, %c0_i32_0 : i32, i32
  }
  func.func @transform_3(%arg0: i32) -> (i32, i32) {
    %c0_i32 = arith.constant 0 : i32
    %c0_i32_0 = arith.constant 0 : i32
    %c0_i32_1 = arith.constant 0 : i32
    return %c0_i32, %c0_i32_0 : i32, i32
  }
  func.func @transform_4(%arg0: i32) -> (i32, i32) {
    %c0_i32 = arith.constant 0 : i32
    %c0_i32_0 = arith.constant 0 : i32
    %c0_i32_1 = arith.constant 0 : i32
    return %c0_i32, %c0_i32_0 : i32, i32
  }
  func.func @transform_5(%arg0: i32) -> (i32, i32) {
    %c0_i32 = arith.constant 0 : i32
    %c0_i32_0 = arith.constant 0 : i32
    %c0_i32_1 = arith.constant 0 : i32
    return %c0_i32, %c0_i32_0 : i32, i32
  }
  func.func @transform_6(%arg0: i32) -> (i32, i32) {
    %c0_i32 = arith.constant 0 : i32
    %c0_i32_0 = arith.constant 0 : i32
    %c0_i32_1 = arith.constant 0 : i32
    return %c0_i32, %c0_i32_0 : i32, i32
  }
  func.func @transform_7(%arg0: i32) -> (i32, i32) {
    %c0_i32 = arith.constant 0 : i32
    %c0_i32_0 = arith.constant 0 : i32
    return %arg0, %c0_i32 : i32, i32
  }
}

</mosaic_0001>

<bundles_post_ra>
// kernel: tpu_custom_call.1
= control target key start
LH: loop header
LB: loop body
LE: loop exit
PB: predicated region body
PF: predicated region fallthrough
CT: control target
= control target key end

     0   :  { %vm42_vm0 = vcmask 1043456   ;;  %v248_v0 = vmov 0.0   ;;  %vm249_vm1 = vmmov 0   ;;  %vm38_vm2 = vcmask 64512   ;;  %s323_s1 = inlined_call_operand.vmem [shape: bf16[8,64], index: 1, kind: input, shape index: {}]   ;;  %s324_s0 = inlined_call_operand.vmem [shape: bf16[8,8], index: 0, kind: input, shape index: {}]   ;;  %s325_s3 = inlined_call_operand.vmem [shape: bf16[64,32], index: 3, kind: input, shape index: {}]   ;;  %s326_s2 = inlined_call_operand.vmem [shape: f32[1,64], index: 2, kind: input, shape index: {}]   ;;  %s327_s6 = inlined_call_operand.<no memory space> [shape: f32[1,1], index: 6, kind: input, shape index: {}]   ;;  %s328_s4 = inlined_call_operand.vmem [shape: f32[1,32], index: 4, kind: input, shape index: {}]   ;;  %s329_s5 = inlined_call_operand.vmem [shape: f32[1,32], index: 5, kind: input, shape index: {}]   ;;  %s330_s7 = inlined_call_operand.vmem [shape: f32[8,1], index: 7, kind: output, shape index: {}]  }
   0x1   :  { %220 = vmatprep.subr.bf16.mxu0 %v248_v0  ;;  %v30_v1 = vld [vmem:[%s323_s1] sm:$0xf]  ;;  %222 = vmatprep.mubr.msk.bf16.mxu0 %vm249_vm1, %v248_v0  ;;  %v241_v5 = vld [vmem:[%s325_s3 + $0x8] sm:$0xff]   ;;  %v242_v6 = vld [vmem:[%s325_s3 + $0x10] sm:$0xff]   ;;  %vm127_vm3 = vcmask 523264   ;;  %v12_v16 = vstv %s327_s6  ;;  %vm180_vm4 = vcmask 261120  }
   0x2   :  { %v44_v2 = vsel %vm42_vm0, %v30_v1, 0  ;;  %226 = vmatprep.subr.bf16.mxu1 %v248_v0  ;;  %v240_v3 = vld [vmem:[%s325_s3] sm:$0xff]   ;;  %234 = vmatprep.mubr.msk.bf16.mxu1 %vm249_vm1, %v248_v0  ;;  %v243_v7 = vld [vmem:[%s325_s3 + $0x18] sm:$0xff]   ;;  %13 = vst [vmem:[#allocation2] sm:$0x1] %v12_v16  ;;  %vm197_vm5 = vcmask 7168  }
   0x3   :  { %221 = vmatpush3.bf16.msra.mxu0 %v44_v2  ;;  %v29_v4 = vld [vmem:[%s324_s0] sm:$0xf]  ;;  %227 = vmatpush3.bf16.msra.mxu1 %v240_v3 }
   0x4   :  { %228 = vmatprep.subr.bf16.mxu1 %v248_v0  ;;  %v203_v8 = vld [vmem:[%s326_s2] ss:$0 sm:$0xff] }
   0x5   :  { %v205_v17 = vld [vmem:[%s328_s4] ss:$0 sm:$0xff] }
   0x6   :  { %223 = vmatmul.mubr.msk.bf16.vlgmr.msra.gmra.mrb[0].mxu0 %vm38_vm2, %v29_v4  ;;  %v211_v22 = vld [vmem:[%s329_s5] ss:$0 sm:$0xff] }
   0x7   :  { %229 = vmatpush3.bf16.msra.mxu1 %v241_v5 }
   0x8   :  { %230 = vmatprep.subr.bf16.mxu1 %v248_v0 }
   0x9   :  { %v212_v27 = vld [vmem:[#allocation2] ss:$0 sm:$0xff] }
   0xb   :  { %231 = vmatpush3.bf16.msra.mxu1 %v242_v6 }
   0xc   :  { %232 = vmatprep.subr.bf16.mxu1 %v248_v0 }
   0xf   :  { %233 = vmatpush3.bf16.msra.mxu1 %v243_v7 }
  0xd9   :  { %v80_v9 = vpop.f32.mrb[0].mxu0 }
  0xda   :  { %v81_v10 = vadd.f32 %v203_v8, %v80_v9  ;;  %v224_v11 = vpop.f32.mrb[1].mxu0 }
  0xdb   :  { %v83_v12 = vpop.f32.mrb[2].mxu0 }
  0xdc   :  { %v86_v13 = vmax.f32 %v81_v10, 0.0  ;;  %v225_v14 = vpop.f32.mrb[3].mxu0 }
  0xde   :  { %v87_v15 = vpack.c.bf16 %v86_v13, %v86_v13 }
  0xe0   :  { %235 = vmatmul.mubr.msk.bf16.vlgmr.msra.gmra.mrb[0].mxu1 %vm127_vm3, %v87_v15 }
 0x1b3   :  { %v165_v18 = vpop.f32.mrb[0].mxu1 }
 0x1b4   :  { %v166_v19 = vadd.f32 %v205_v17, %v165_v18  ;;  %v236_v20 = vpop.f32.mrb[1].mxu1 }
 0x1b5   :  { %v168_v21 = vpop.f32.mrb[2].mxu1 }
 0x1b6   :  { %v171_v23 = vmax.f32 %v166_v19, 0.0  ;;  %v237_v24 = vpop.f32.mrb[3].mxu1 }
 0x1b8   :  { %v179_v25 = vmul.f32 %v211_v22, %v171_v23 }
 0x1ba   :  { %v181_v26 = vsel %vm180_vm4, %v179_v25, 0.0 }
 0x1bb   :  { %182 = vadd.xlane.f32.xlu0 %v181_v26 }
 0x248   :  { %v183_v28 = vpop.xlane.xlu0 %182 }
 0x249   :  { %v191_v29 = vadd.f32 %v212_v27, %v183_v28 }
 0x24b   :  { %v192_v30 = vsub.f32 0.0, %v191_v29 }
 0x24d   :  { %v193_v31 = vmul.f32 1.442695, %v192_v30 }
 0x24f   :  { %244 = vpow2.f32 %v193_v31 }
 0x259   :  { %v245_v32 = vpop.eup %244 }
 0x25a   :  { %v195_v33 = vadd.f32 1.0, %v245_v32 }
 0x25c   :  { %246 = vrcp.f32 %v195_v33 }
 0x266   :  { %v247_v34 = vpop.eup %246 }
 0x267   :  { %198 = vst.msk [vmem:[%s330_s7] sm:$0xff] %vm197_vm5, %v247_v34 }

</bundles_post_ra>
